<compile_context>
chip_gen: v7x
topology: tpu7x:2x2x1
jax: 0.10.0
libtpu: 0.0.40
codegen_flags: <defaults>
</compile_context>

<pallas_src>
import functools
import math

import jax
import jax.numpy as jnp
from jax.experimental import pallas as pl
from jax.experimental.pallas import tpu as pltpu


_VMEM_LIMIT = 32 * 1024 * 1024  # safe on v5e/v6e/v7x; per-step footprint is tiny


def _round_up(x, m):
    return (x + m - 1) // m * m


def _normalize_kernel(x_ref, o_ref, *, inv_sqrt_temp):
    # F.normalize(p=2, dim=1): x / max(||x||_2, 1e-12); the 1/temp of the score
    # matrix is folded in as 1/sqrt(temp) on each operand (rsqrt -> EUP slot).
    x = x_ref[...].astype(jnp.float32)                          # (TQ, D)
    ss = jnp.sum(x * x, axis=1, keepdims=True)                  # (TQ, 1)
    inv = jax.lax.rsqrt(jnp.maximum(ss, 1e-24)) * inv_sqrt_temp
    o_ref[...] = x * inv


def _scl_stats_kernel(xq_ref, xk_ref, yq_ref, yk_ref,
                      logden_ref, a_ref, cnt_ref, *, n, n_pad):
    iq = pl.program_id(0)
    ik = pl.program_id(1)
    nk = pl.num_programs(1)

    @pl.when(ik == 0)
    def _init():
        logden_ref[...] = jnp.zeros_like(logden_ref)
        a_ref[...] = jnp.zeros_like(a_ref)
        cnt_ref[...] = jnp.zeros_like(cnt_ref)

    # (TK, TQ) score tile: s[j, i] = <x_n[key j], x_n[query i]> / temp.
    # Keys on the sublane axis => per-query reductions produce lane-dense (1, TQ).
    s = jax.lax.dot_general(xk_ref[...], xq_ref[...],
                            (((1,), (1,)), ((), ())),
                            preferred_element_type=jnp.float32)
    tk, tq = s.shape

    kidx = ik * tk + jax.lax.broadcasted_iota(jnp.int32, (tk, tq), 0)
    qidx = iq * tq + jax.lax.broadcasted_iota(jnp.int32, (tk, tq), 1)
    offdiag = kidx != qidx
    # Padded keys have label -1 (never matches a real label), so the same-class
    # terms need no validity mask; the exp-sum does (exp(0)=1 from padded rows).
    den_mask = offdiag if n == n_pad else (offdiag & (kidx < n))

    same = yk_ref[...] == yq_ref[...]                           # (TK, TQ)

    e = jnp.exp(s)  # safe: |s| <= 1/temp after L2 normalization
    logden_ref[...] += jnp.sum(jnp.where(den_mask, e, 0.0), axis=0, keepdims=True)
    a_ref[...] += jnp.sum(jnp.where(same & offdiag, s, 0.0), axis=0, keepdims=True)
    cnt_ref[...] += jnp.sum(same.astype(jnp.float32), axis=0, keepdims=True)

    @pl.when(ik == nk - 1)
    def _finalize():
        logden_ref[...] = jnp.log(logden_ref[...] + 1e-10)      # logden in place


def _scl_loss_kernel(yq_ref, yk_ref, ldk_ref, ldq_ref, a_ref, cnt_ref, out_ref):
    ik = pl.program_id(1)
    nk = pl.num_programs(1)

    @pl.when(ik == 0)
    def _init():
        out_ref[...] = jnp.zeros_like(out_ref)

    same = (yk_ref[...] == yq_ref[...]).astype(jnp.float32)     # (TK, TQ)
    # Accumulate B'_i = sum_{j : y_j == y_i} logden[j] (self included).
    out_ref[...] += jnp.sum(same * ldk_ref[...], axis=0, keepdims=True)

    @pl.when(ik == nk - 1)
    def _finalize():
        b = out_ref[...] - ldq_ref[...]          # drop the self term (j == i)
        out_ref[...] = -(a_ref[...] - b) / jnp.maximum(cnt_ref[...], 1.0)


def scl_loss(encoding, y, num_classes, temp=0.3, tile=256):
    """Per-sample supervised contrastive loss; matches SCLLoss.forward."""
    # NOTE: assumes 0 <= y < num_classes (torch one_hot contract); under that
    # contract one_hot(y).T[y] reduces to a label-equality mask, so num_classes
    # drops out numerically.
    del num_classes
    n, d = encoding.shape
    n_pad = _round_up(n, 128)
    tile = min(tile, n_pad)
    n_pad = _round_up(n, tile)
    grid_q = n_pad // tile
    grid_k = n_pad // tile

    y = y.astype(jnp.int32)
    if n_pad != n:
        encoding = jnp.pad(encoding, ((0, n_pad - n), (0, 0)))
        y = jnp.pad(y, (0, n_pad - n), constant_values=-1)  # never matches real labels
    y_row = y.reshape(1, n_pad)
    y_col = y.reshape(n_pad, 1)

    cparams_1d = pltpu.CompilerParams(
        dimension_semantics=("parallel",), vmem_limit_bytes=_VMEM_LIMIT)
    cparams_2d = pltpu.CompilerParams(
        dimension_semantics=("parallel", "arbitrary"), vmem_limit_bytes=_VMEM_LIMIT)

    # Kernel 0: L2 normalize rows, fold in 1/sqrt(temp).  Kept in f32 for
    # reference parity. TODO(synk): optionally emit bf16 x_n here for the bf16
    # MXU path on v6e/v7x when inputs are bf16 and the precision loss is OK.
    x_n = pl.pallas_call(
        functools.partial(_normalize_kernel,
                          inv_sqrt_temp=float(1.0 / math.sqrt(temp))),
        out_shape=jax.ShapeDtypeStruct((n_pad, d), jnp.float32),
        grid=(grid_q,),
        in_specs=[pl.BlockSpec((tile, d), lambda i: (i, 0))],
        out_specs=pl.BlockSpec((tile, d), lambda i: (i, 0)),
        compiler_params=cparams_1d,
    )(encoding)

    # Kernel 1: per-row statistics (logden, A, count), lane-dense (1, N_pad).
    row_spec = pl.BlockSpec((1, tile), lambda iq, ik: (0, iq))
    logden, a_sum, cnt = pl.pallas_call(
        functools.partial(_scl_stats_kernel, n=n, n_pad=n_pad),
        out_shape=(jax.ShapeDtypeStruct((1, n_pad), jnp.float32),
                   jax.ShapeDtypeStruct((1, n_pad), jnp.float32),
                   jax.ShapeDtypeStruct((1, n_pad), jnp.float32)),
        grid=(grid_q, grid_k),
        in_specs=[
            pl.BlockSpec((tile, d), lambda iq, ik: (iq, 0)),    # queries
            pl.BlockSpec((tile, d), lambda iq, ik: (ik, 0)),    # keys
            pl.BlockSpec((1, tile), lambda iq, ik: (0, iq)),    # y (query, lanes)
            pl.BlockSpec((tile, 1), lambda iq, ik: (ik, 0)),    # y (key, sublanes)
        ],
        out_specs=(row_spec, row_spec, row_spec),
        compiler_params=cparams_2d,
    )(x_n, x_n, y_row, y_col)

    # Kernel 2: combine into the per-sample loss, lane-dense (1, N_pad).
    loss = pl.pallas_call(
        _scl_loss_kernel,
        out_shape=jax.ShapeDtypeStruct((1, n_pad), jnp.float32),
        grid=(grid_q, grid_k),
        in_specs=[
            pl.BlockSpec((1, tile), lambda iq, ik: (0, iq)),    # y (query)
            pl.BlockSpec((tile, 1), lambda iq, ik: (ik, 0)),    # y (key)
            pl.BlockSpec((tile, 1), lambda iq, ik: (ik, 0)),    # logden (key side)
            pl.BlockSpec((1, tile), lambda iq, ik: (0, iq)),    # logden (query side)
            pl.BlockSpec((1, tile), lambda iq, ik: (0, iq)),    # A
            pl.BlockSpec((1, tile), lambda iq, ik: (0, iq)),    # count
        ],
        out_specs=pl.BlockSpec((1, tile), lambda iq, ik: (0, iq)),
        compiler_params=cparams_2d,
    )(y_row, y_col, logden.reshape(n_pad, 1), logden, a_sum, cnt)

    return loss[0, :n]                                          # (N,) f32


def _scl_loss_reference(encoding, y, temp):
    # Pure-JAX transcription of the PyTorch module (incl. its column-wise
    # broadcast of the log-denominator).
    x = encoding / jnp.maximum(
        jnp.sqrt(jnp.sum(encoding * encoding, axis=1, keepdims=True)), 1e-12)
    dot = (x @ x.T) / temp
    n = encoding.shape[0]
    y_mask = (y[:, None] == y[None, :]).astype(jnp.float32)
    diag_mask = 1.0 - jnp.eye(n, dtype=jnp.float32)
    den = jnp.exp(dot) * diag_mask
    inner = dot - jnp.log(jnp.sum(den, axis=1) + 1e-10)
    con = inner * y_mask * diag_mask
    return -jnp.sum(con, axis=1) / jnp.sum(y_mask, axis=1)


if __name__ == "__main__":
    key = jax.random.PRNGKey(0)
    k1, k2, k3, k4 = jax.random.split(key, 4)

    # (16, 32): single-tile path.  (300, 32): multi-tile grid + padding path.
    for (n, d, c, ke, ky) in [(16, 32, 4, k1, k2), (300, 32, 5, k3, k4)]:
        enc = jax.random.normal(ke, (n, d), dtype=jnp.float32)
        y = jax.random.randint(ky, (n,), 0, c, dtype=jnp.int32)

        loss = jax.block_until_ready(scl_loss(enc, y, num_classes=c, temp=0.3))
        assert loss.shape == (n,) and loss.dtype == jnp.float32

        ref = jax.block_until_ready(_scl_loss_reference(enc, y, 0.3))
        assert jnp.allclose(loss, ref, rtol=1e-3, atol=1e-3), (
            float(jnp.max(jnp.abs(loss - ref))))

    print("KERNEL_OK")
</pallas_src>

<mosaic_0001>
module attributes {stable_mosaic.version = 11 : i64} {
  func.func @_normalize_kernel(%arg0: i32, %arg1: memref<128x32xf32, #tpu.memory_space<vmem>>, %arg2: memref<128x32xf32, #tpu.memory_space<vmem>>) attributes {dimension_semantics = [#tpu.dimension_semantics<parallel>], iteration_bounds = array<i64: 1>, scalar_prefetch = 0 : i64, scratch_operands = 0 : i64, tpu.core_type = #tpu.core_type<tc>, window_params = [{transform_indices = @transform_0, window_bounds = array<i64: 128, 32>}, {transform_indices = @transform_1, window_bounds = array<i64: 128, 32>}]} {
    %c0 = arith.constant 0 : index
    %c0_0 = arith.constant 0 : index
    %0 = vector.load %arg1[%c0, %c0_0] : memref<128x32xf32, #tpu.memory_space<vmem>>, vector<128x32xf32>
    %1 = arith.mulf %0, %0 : vector<128x32xf32>
    %cst = arith.constant dense<0.000000e+00> : vector<128xf32>
    %2 = vector.multi_reduction <add>, %1, %cst [1] : vector<128x32xf32> to vector<128xf32>
    %3 = vector.shape_cast %2 : vector<128xf32> to vector<128x1xf32>
    %cst_1 = arith.constant 1.000000e-24 : f32
    %4 = vector.broadcast %cst_1 : f32 to vector<128x1xf32>
    %5 = arith.maximumf %3, %4 : vector<128x1xf32>
    %6 = math.rsqrt %5 : vector<128x1xf32>
    %cst_2 = arith.constant 1.82574189 : f32
    %7 = vector.broadcast %cst_2 : f32 to vector<128x1xf32>
    %8 = arith.mulf %6, %7 : vector<128x1xf32>
    %9 = vector.broadcast %8 : vector<128x1xf32> to vector<128x32xf32>
    %10 = arith.mulf %0, %9 : vector<128x32xf32>
    %c0_3 = arith.constant 0 : index
    %c0_4 = arith.constant 0 : index
    %11 = vector.load %arg2[%c0_3, %c0_4] : memref<128x32xf32, #tpu.memory_space<vmem>>, vector<128x32xf32>
    tpu.vector_store %arg2[%c0_3, %c0_4], %10 {strides = array<i32>} : memref<128x32xf32, #tpu.memory_space<vmem>>, vector<128x32xf32>,
    return
  }
  func.func @transform_0(%arg0: i32) -> (i32, i32) {
    %c0_i32 = arith.constant 0 : i32
    %c0_i32_0 = arith.constant 0 : i32
    return %arg0, %c0_i32 : i32, i32
  }
  func.func @transform_1(%arg0: i32) -> (i32, i32) {
    %c0_i32 = arith.constant 0 : i32
    %c0_i32_0 = arith.constant 0 : i32
    return %arg0, %c0_i32 : i32, i32
  }
}

</mosaic_0001>

<bundles_post_ra>
// kernel: tpu_custom_call.1
= control target key start
LH: loop header
LB: loop body
LE: loop exit
PB: predicated region body
PF: predicated region fallthrough
CT: control target
= control target key end

     0   :  { %vm40_vm0 = vcmask 261120   ;;  %s423_s0 = inlined_call_operand.vmem [shape: f32[128,32], index: 0, kind: input, shape index: {}]   ;;  %s424_s1 = inlined_call_operand.vmem [shape: f32[128,32], index: 1, kind: output, shape index: {}]  }
   0x1   :  { %v218_v0 = vld [vmem:[%s423_s0 + $0x10] sm:$0xff]  ;;  %v223_v1 = vld [vmem:[%s423_s0] sm:$0xff]  ;;  %v228_v2 = vld [vmem:[%s423_s0 + $0x18] sm:$0xff] }
   0x2   :  { %v26_v3 = vmul.f32 %v218_v0, %v218_v0  ;;  %v24_v4 = vmul.f32 %v223_v1, %v223_v1  ;;  %v27_v5 = vmul.f32 %v228_v2, %v228_v2  ;;  %v239_v6 = vld [vmem:[%s423_s0 + $0x8] sm:$0xff]  ;;  %v251_v9 = vld [vmem:[%s423_s0 + $0x20] sm:$0xff]  ;;  %v264_v16 = vld [vmem:[%s423_s0 + $0x38] sm:$0xff] }
   0x3   :  { %v25_v7 = vmul.f32 %v239_v6, %v239_v6  ;;  %v246_v8 = vld [vmem:[%s423_s0 + $0x28] sm:$0xff]  ;;  %v28_v15 = vmul.f32 %v251_v9, %v251_v9  ;;  %v269_v17 = vld [vmem:[%s423_s0 + $0x30] sm:$0xff]  ;;  %v31_v20 = vmul.f32 %v264_v16, %v264_v16  ;;  %v285_v23 = vld [vmem:[%s423_s0 + $0x40] sm:$0xff] }
   0x4   :  { %v47_v10 = vsel %vm40_vm0, %v26_v3, 0.0  ;;  %v41_v11 = vsel %vm40_vm0, %v24_v4, 0.0  ;;  %v50_v12 = vsel %vm40_vm0, %v27_v5, 0.0  ;;  %v29_v14 = vmul.f32 %v246_v8, %v246_v8  ;;  %v280_v22 = vld [vmem:[%s423_s0 + $0x48] sm:$0xff]  ;;  %v296_v28 = vld [vmem:[%s423_s0 + $0x58] sm:$0xff]  ;;  %v301_v29 = vld [vmem:[%s423_s0 + $0x50] sm:$0xff] }
   0x5   :  { %48 = vadd.xlane.f32.xlu1 %v47_v10  ;;  %42 = vadd.xlane.f32.xlu0 %v41_v11  ;;  %v44_v13 = vsel %vm40_vm0, %v25_v7, 0.0  ;;  %v53_v19 = vsel %vm40_vm0, %v28_v15, 0.0  ;;  %v30_v21 = vmul.f32 %v269_v17, %v269_v17  ;;  %v62_v24 = vsel %vm40_vm0, %v31_v20, 0.0  ;;  %v312_v34 = vld [vmem:[%s423_s0 + $0x68] sm:$0xff]  ;;  %v317_v35 = vld [vmem:[%s423_s0 + $0x60] sm:$0xff]  ;;  %v328_v40 = vld [vmem:[%s423_s0 + $0x78] sm:$0xff] }
   0x6   :  { %v56_v18 = vsel %vm40_vm0, %v29_v14, 0.0  ;;  %v33_v26 = vmul.f32 %v280_v22, %v280_v22  ;;  %v32_v27 = vmul.f32 %v285_v23, %v285_v23  ;;  %v35_v32 = vmul.f32 %v296_v28, %v296_v28  ;;  %v333_v41 = vld [vmem:[%s423_s0 + $0x70] sm:$0xff] }
   0x7   :  { %v59_v25 = vsel %vm40_vm0, %v30_v21, 0.0  ;;  %v34_v33 = vmul.f32 %v301_v29, %v301_v29  ;;  %v37_v38 = vmul.f32 %v312_v34, %v312_v34  ;;  %v36_v39 = vmul.f32 %v317_v35, %v317_v35 }
   0x8   :  { %v68_v30 = vsel %vm40_vm0, %v33_v26, 0.0  ;;  %v65_v31 = vsel %vm40_vm0, %v32_v27, 0.0  ;;  %v74_v36 = vsel %vm40_vm0, %v35_v32, 0.0  ;;  %v39_v44 = vmul.f32 %v328_v40, %v328_v40 }
   0x9   :  { %51 = vadd.xlane.f32.xlu1 %v50_v12  ;;  %45 = vadd.xlane.f32.xlu0 %v44_v13  ;;  %v71_v37 = vsel %vm40_vm0, %v34_v33, 0.0  ;;  %v80_v42 = vsel %vm40_vm0, %v37_v38, 0.0  ;;  %v77_v43 = vsel %vm40_vm0, %v36_v39, 0.0  ;;  %v38_v45 = vmul.f32 %v333_v41, %v333_v41 }
   0xa   :  { %v86_v46 = vsel %vm40_vm0, %v39_v44, 0.0 }
   0xb   :  { %v83_v47 = vsel %vm40_vm0, %v38_v45, 0.0 }
   0xd   :  { %57 = vadd.xlane.f32.xlu1 %v56_v18  ;;  %54 = vadd.xlane.f32.xlu0 %v53_v19 }
  0x11   :  { %63 = vadd.xlane.f32.xlu1 %v62_v24  ;;  %60 = vadd.xlane.f32.xlu0 %v59_v25 }
  0x15   :  { %69 = vadd.xlane.f32.xlu1 %v68_v30  ;;  %66 = vadd.xlane.f32.xlu0 %v65_v31 }
  0x19   :  { %75 = vadd.xlane.f32.xlu1 %v74_v36  ;;  %72 = vadd.xlane.f32.xlu0 %v71_v37 }
  0x1d   :  { %81 = vadd.xlane.f32.xlu1 %v80_v42  ;;  %78 = vadd.xlane.f32.xlu0 %v77_v43 }
  0x21   :  { %87 = vadd.xlane.f32.xlu1 %v86_v46  ;;  %84 = vadd.xlane.f32.xlu0 %v83_v47 }
  0x92   :  { %v49_v48 = vpop.xlane.xlu1 %48  ;;  %v43_v49 = vpop.xlane.xlu0 %42 }
  0x93   :  { %v91_v50 = vmax.f32 %v49_v48, 1e-24  ;;  %v89_v51 = vmax.f32 %v43_v49, 1e-24 }
  0x95   :  { %173 = vrsqrt.f32 %v91_v50 }
  0x96   :  { %175 = vrsqrt.f32 %v89_v51  ;;  %v52_v52 = vpop.xlane.xlu1 %51  ;;  %v46_v53 = vpop.xlane.xlu0 %45 }
  0x97   :  { %v92_v54 = vmax.f32 %v52_v52, 1e-24  ;;  %v90_v55 = vmax.f32 %v46_v53, 1e-24 }
  0x99   :  { %177 = vrsqrt.f32 %v92_v54 }
  0x9a   :  { %179 = vrsqrt.f32 %v90_v55  ;;  %v58_v56 = vpop.xlane.xlu1 %57  ;;  %v55_v57 = vpop.xlane.xlu0 %54 }
  0x9b   :  { %v94_v58 = vmax.f32 %v58_v56, 1e-24  ;;  %v93_v59 = vmax.f32 %v55_v57, 1e-24 }
  0x9d   :  { %181 = vrsqrt.f32 %v94_v58 }
  0x9e   :  { %183 = vrsqrt.f32 %v93_v59  ;;  %v64_v60 = vpop.xlane.xlu1 %63  ;;  %v61_v61 = vpop.xlane.xlu0 %60 }
  0x9f   :  { %v174_v62 = vpop.eup %173  ;;  %v96_v63 = vmax.f32 %v64_v60, 1e-24  ;;  %v95_v3 = vmax.f32 %v61_v61, 1e-24 }
  0xa0   :  { %v176_v4 = vpop.eup %175  ;;  %v123_v5 = vmul.f32 1.8257419, %v174_v62 }
  0xa1   :  { %v121_v7 = vmul.f32 1.8257419, %v176_v4  ;;  %185 = vrsqrt.f32 %v96_v63 }
  0xa2   :  { %v139_v10 = vmul.f32 %v123_v5, %v218_v0  ;;  %187 = vrsqrt.f32 %v95_v3  ;;  %v70_v11 = vpop.xlane.xlu1 %69  ;;  %v67_v12 = vpop.xlane.xlu0 %66 }
  0xa3   :  { %v178_v13 = vpop.eup %177  ;;  %v137_v14 = vmul.f32 %v121_v7, %v223_v1  ;;  %v98_v15 = vmax.f32 %v70_v11, 1e-24  ;;  %v97_v18 = vmax.f32 %v67_v12, 1e-24 }
  0xa4   :  { %v180_v19 = vpop.eup %179  ;;  %155 = vst.msk [vmem:[%s424_s1 + $0x10] sm:$0xff] %vm40_vm0, %v139_v10  ;;  %v124_v20 = vmul.f32 1.8257419, %v178_v13 }
  0xa5   :  { %153 = vst.msk [vmem:[%s424_s1] sm:$0xff] %vm40_vm0, %v137_v14  ;;  %v122_v0 = vmul.f32 1.8257419, %v180_v19  ;;  %189 = vrsqrt.f32 %v98_v15 }
  0xa6   :  { %v140_v21 = vmul.f32 %v124_v20, %v228_v2  ;;  %191 = vrsqrt.f32 %v97_v18  ;;  %v76_v1 = vpop.xlane.xlu1 %75  ;;  %v73_v24 = vpop.xlane.xlu0 %72 }
  0xa7   :  { %v182_v25 = vpop.eup %181  ;;  %v138_v26 = vmul.f32 %v122_v0, %v239_v6  ;;  %v100_v27 = vmax.f32 %v76_v1, 1e-24  ;;  %v99_v30 = vmax.f32 %v73_v24, 1e-24 }
  0xa8   :  { %v184_v31 = vpop.eup %183  ;;  %156 = vst.msk [vmem:[%s424_s1 + $0x18] sm:$0xff] %vm40_vm0, %v140_v21  ;;  %v126_v32 = vmul.f32 1.8257419, %v182_v25 }
  0xa9   :  { %154 = vst.msk [vmem:[%s424_s1 + $0x8] sm:$0xff] %vm40_vm0, %v138_v26  ;;  %v125_v2 = vmul.f32 1.8257419, %v184_v31  ;;  %193 = vrsqrt.f32 %v100_v27 }
  0xaa   :  { %v142_v33 = vmul.f32 %v126_v32, %v246_v8  ;;  %195 = vrsqrt.f32 %v99_v30  ;;  %v82_v6 = vpop.xlane.xlu1 %81  ;;  %v79_v36 = vpop.xlane.xlu0 %78 }
  0xab   :  { %v186_v37 = vpop.eup %185  ;;  %v141_v38 = vmul.f32 %v125_v2, %v251_v9  ;;  %v102_v39 = vmax.f32 %v82_v6, 1e-24  ;;  %v101_v42 = vmax.f32 %v79_v36, 1e-24 }
  0xac   :  { %v188_v43 = vpop.eup %187  ;;  %158 = vst.msk [vmem:[%s424_s1 + $0x28] sm:$0xff] %vm40_vm0, %v142_v33  ;;  %v128_v44 = vmul.f32 1.8257419, %v186_v37 }
  0xad   :  { %157 = vst.msk [vmem:[%s424_s1 + $0x20] sm:$0xff] %vm40_vm0, %v141_v38  ;;  %v127_v8 = vmul.f32 1.8257419, %v188_v43  ;;  %197 = vrsqrt.f32 %v102_v39 }
  0xae   :  { %v144_v45 = vmul.f32 %v128_v44, %v264_v16  ;;  %199 = vrsqrt.f32 %v101_v42  ;;  %v88_v9 = vpop.xlane.xlu1 %87  ;;  %v85_v46 = vpop.xlane.xlu0 %84 }
  0xaf   :  { %v190_v47 = vpop.eup %189  ;;  %v143_v48 = vmul.f32 %v127_v8, %v269_v17  ;;  %v104_v49 = vmax.f32 %v88_v9, 1e-24  ;;  %v103_v50 = vmax.f32 %v85_v46, 1e-24 }
  0xb0   :  { %v192_v51 = vpop.eup %191  ;;  %160 = vst.msk [vmem:[%s424_s1 + $0x38] sm:$0xff] %vm40_vm0, %v144_v45  ;;  %v130_v52 = vmul.f32 1.8257419, %v190_v47 }
  0xb1   :  { %159 = vst.msk [vmem:[%s424_s1 + $0x30] sm:$0xff] %vm40_vm0, %v143_v48  ;;  %v129_v16 = vmul.f32 1.8257419, %v192_v51  ;;  %201 = vrsqrt.f32 %v104_v49 }
  0xb2   :  { %v146_v53 = vmul.f32 %v130_v52, %v280_v22  ;;  %203 = vrsqrt.f32 %v103_v50 }
  0xb3   :  { %v194_v17 = vpop.eup %193  ;;  %v145_v54 = vmul.f32 %v129_v16, %v285_v23 }
  0xb4   :  { %v196_v55 = vpop.eup %195  ;;  %162 = vst.msk [vmem:[%s424_s1 + $0x48] sm:$0xff] %vm40_vm0, %v146_v53  ;;  %v132_v56 = vmul.f32 1.8257419, %v194_v17 }
  0xb5   :  { %161 = vst.msk [vmem:[%s424_s1 + $0x40] sm:$0xff] %vm40_vm0, %v145_v54  ;;  %v131_v57 = vmul.f32 1.8257419, %v196_v55 }
  0xb6   :  { %v148_v58 = vmul.f32 %v132_v56, %v296_v28 }
  0xb7   :  { %v198_v22 = vpop.eup %197  ;;  %v147_v59 = vmul.f32 %v131_v57, %v301_v29 }
  0xb8   :  { %v200_v60 = vpop.eup %199  ;;  %164 = vst.msk [vmem:[%s424_s1 + $0x58] sm:$0xff] %vm40_vm0, %v148_v58  ;;  %v134_v23 = vmul.f32 1.8257419, %v198_v22 }
  0xb9   :  { %163 = vst.msk [vmem:[%s424_s1 + $0x50] sm:$0xff] %vm40_vm0, %v147_v59  ;;  %v133_v61 = vmul.f32 1.8257419, %v200_v60 }
  0xba   :  { %v150_v62 = vmul.f32 %v134_v23, %v312_v34 }
  0xbb   :  { %v202_v63 = vpop.eup %201  ;;  %v149_v28 = vmul.f32 %v133_v61, %v317_v35 }
  0xbc   :  { %v204_v3 = vpop.eup %203  ;;  %166 = vst.msk [vmem:[%s424_s1 + $0x68] sm:$0xff] %vm40_vm0, %v150_v62  ;;  %v136_v29 = vmul.f32 1.8257419, %v202_v63 }
  0xbd   :  { %165 = vst.msk [vmem:[%s424_s1 + $0x60] sm:$0xff] %vm40_vm0, %v149_v28  ;;  %v135_v4 = vmul.f32 1.8257419, %v204_v3 }
  0xbe   :  { %v152_v5 = vmul.f32 %v136_v29, %v328_v40 }
  0xbf   :  { %v151_v34 = vmul.f32 %v135_v4, %v333_v41 }
  0xc0   :  { %168 = vst.msk [vmem:[%s424_s1 + $0x78] sm:$0xff] %vm40_vm0, %v152_v5 }
  0xc1   :  { %167 = vst.msk [vmem:[%s424_s1 + $0x70] sm:$0xff] %vm40_vm0, %v151_v34 }

</bundles_post_ra>
